<compile_context>
chip_gen: v7x
topology: tpu7x:2x2x1
jax: 0.10.0
libtpu: 0.0.40
codegen_flags: <defaults>
</compile_context>

<pallas_src>
import functools

import jax
import jax.numpy as jnp
import numpy as np
from jax import lax
from jax.experimental import pallas as pl
from jax.experimental.pallas import tpu as pltpu

NEG_SLOPE = 0.2   # LeakyReLU(0.2)
EPS = 1e-5        # nn.InstanceNorm2d default eps


# ---------------------------------------------------------------------------
# Pallas kernels
# ---------------------------------------------------------------------------
def _conv_bias_lrelu_kernel(p_ref, w_ref, b_ref, o_ref):
    """first_block: (Cout,K)@(K,tn) + bias + LeakyReLU; lane axis = B*Ho*Wo."""
    acc = jnp.dot(w_ref[...], p_ref[...], preferred_element_type=jnp.float32)
    acc = acc + b_ref[...]                                   # (Cout, tn) + (Cout, 1)
    o_ref[...] = jnp.where(acc > 0, acc, NEG_SLOPE * acc).astype(o_ref.dtype)


def _conv_inorm_lrelu_kernel(p_ref, w_ref, g_ref, b_ref, o_ref, *, hw):
    """ConvBlock: conv GEMM + InstanceNorm(affine) + LeakyReLU fused epilogue.

    One grid step = one sample; the full (lane-padded) spatial extent sits on the
    lane axis.  Padded patch columns are exactly zero, so single-pass sum / sumsq
    divided by the true `hw` give exact per-(sample, channel) statistics.
    """
    acc = jnp.dot(w_ref[...], p_ref[0], preferred_element_type=jnp.float32)  # (Cout, HWp)
    inv_n = 1.0 / float(hw)
    s1 = jnp.sum(acc, axis=1, keepdims=True)                 # (Cout, 1)
    s2 = jnp.sum(acc * acc, axis=1, keepdims=True)           # (Cout, 1)
    mean = s1 * inv_n
    var = jnp.maximum(s2 * inv_n - mean * mean, 0.0)
    y = (acc - mean) * lax.rsqrt(var + EPS)
    y = y * g_ref[...] + b_ref[...]
    o_ref[0] = jnp.where(y > 0, y, NEG_SLOPE * y).astype(o_ref.dtype)


# ---------------------------------------------------------------------------
# Host-side glue (pure data movement; activations already bf16 at this point)
# ---------------------------------------------------------------------------
def _round_up(n, m):
    return ((n + m - 1) // m) * m


def _lane_tile(n):
    """Largest lane tile dividing n (n is a multiple of 128) with >= 2 grid steps."""
    for t in (1024, 512, 256, 128):
        if n % t == 0 and n // t >= 2:
            return t
    return n if n <= 1024 else 128


def _im2col_merged(x, k, stride):
    """x (B,C,H,W) -> patches (C*k*k, B*Ho*Wo), K order (c, kh, kw)-major."""
    B, C, H, W = x.shape
    Ho = (H - k) // stride + 1
    Wo = (W - k) // stride + 1
    cols = []
    for kh in range(k):
        for kw in range(k):
            cols.append(
                x[:, :,
                  kh:kh + stride * (Ho - 1) + 1:stride,
                  kw:kw + stride * (Wo - 1) + 1:stride])          # (B, C, Ho, Wo)
    p = jnp.stack(cols, axis=2)                                   # (B, C, k*k, Ho, Wo)
    p = p.transpose(1, 2, 0, 3, 4).reshape(C * k * k, B * Ho * Wo)
    return p, Ho, Wo


def _im2col_cf(x, k, stride):
    """x (B,C,H,W) -> patches (B, C*k*k, Ho*Wo), K order (c, kh, kw)-major."""
    B, C, H, W = x.shape
    Ho = (H - k) // stride + 1
    Wo = (W - k) // stride + 1
    cols = []
    for kh in range(k):
        for kw in range(k):
            cols.append(
                x[:, :,
                  kh:kh + stride * (Ho - 1) + 1:stride,
                  kw:kw + stride * (Wo - 1) + 1:stride])          # (B, C, Ho, Wo)
    p = jnp.stack(cols, axis=2)                                   # (B, C, k*k, Ho, Wo)
    p = p.reshape(B, C * k * k, Ho * Wo)
    return p, Ho, Wo


# ---------------------------------------------------------------------------
# Conv wrappers
# ---------------------------------------------------------------------------
def conv_lrelu_pallas(x, w, b, *, stride, pad):
    """first_block: Conv2d(k=4, bias, reflect pad) + LeakyReLU, batch merged on lanes."""
    B, Cin, H, W = x.shape
    Cout, _, k, _ = w.shape
    x = x.astype(jnp.bfloat16)                 # cast BEFORE im2col: slab written at 2B/elem
    if pad > 0:
        x = jnp.pad(x, ((0, 0), (0, 0), (pad, pad), (pad, pad)), mode="reflect")
    p, Ho, Wo = _im2col_merged(x, k, stride)   # (K, B*Ho*Wo), bf16
    K = Cin * k * k
    N = B * Ho * Wo
    Np = _round_up(N, 128)
    if Np != N:
        p = jnp.pad(p, ((0, 0), (0, Np - N)))
    tn = _lane_tile(Np)
    wm = w.reshape(Cout, K).astype(jnp.bfloat16)
    bias = b.reshape(Cout, 1).astype(jnp.float32)

    out = pl.pallas_call(
        _conv_bias_lrelu_kernel,
        out_shape=jax.ShapeDtypeStruct((Cout, Np), jnp.bfloat16),
        grid=(Np // tn,),
        in_specs=[
            pl.BlockSpec((K, tn), lambda s: (0, s)),
            pl.BlockSpec((Cout, K), lambda s: (0, 0)),   # VMEM-resident
            pl.BlockSpec((Cout, 1), lambda s: (0, 0)),   # VMEM-resident
        ],
        out_specs=pl.BlockSpec((Cout, tn), lambda s: (0, s)),
        compiler_params=pltpu.CompilerParams(
            dimension_semantics=("parallel",)),
    )(p, wm, bias)

    out = out[:, :N].reshape(Cout, B, Ho * Wo).transpose(1, 0, 2)
    return out.reshape(B, Cout, Ho, Wo)        # bf16, NCHW


def convblock_pallas(x, w, gamma, beta, *, stride, out_dtype=jnp.bfloat16):
    """ConvBlock: Conv2d(k=4, no bias, pad=0) + InstanceNorm(affine) + LeakyReLU."""
    B, Cin, H, W = x.shape
    Cout, _, k, _ = w.shape
    x = x.astype(jnp.bfloat16)
    p, Ho, Wo = _im2col_cf(x, k, stride)       # (B, K, HW), bf16
    K = Cin * k * k
    HW = Ho * Wo
    HWp = _round_up(HW, 128)                   # lane-dense stores / MXU columns
    if HWp != HW:
        p = jnp.pad(p, ((0, 0), (0, 0), (0, HWp - HW)))
    wm = w.reshape(Cout, K).astype(jnp.bfloat16)
    g = gamma.reshape(Cout, 1).astype(jnp.float32)
    bt = beta.reshape(Cout, 1).astype(jnp.float32)

    kernel = functools.partial(_conv_inorm_lrelu_kernel, hw=HW)

    out = pl.pallas_call(
        kernel,
        out_shape=jax.ShapeDtypeStruct((B, Cout, HWp), out_dtype),
        grid=(B,),
        in_specs=[
            pl.BlockSpec((1, K, HWp), lambda bb: (bb, 0, 0)),
            pl.BlockSpec((Cout, K), lambda bb: (0, 0)),      # VMEM-resident
            pl.BlockSpec((Cout, 1), lambda bb: (0, 0)),
            pl.BlockSpec((Cout, 1), lambda bb: (0, 0)),
        ],
        out_specs=pl.BlockSpec((1, Cout, HWp), lambda bb: (bb, 0, 0)),
        compiler_params=pltpu.CompilerParams(
            dimension_semantics=("parallel",)),
    )(p, wm, g, bt)

    out = out[:, :, :HW]                       # drop padded (garbage) lanes
    return out.reshape(B, Cout, Ho, Wo)


# ---------------------------------------------------------------------------
# Discriminator: parameter init + forward
# ---------------------------------------------------------------------------
def init_discriminator(key, in_channels, features):
    params = {}
    k0, kb, key = jax.random.split(key, 3)
    params["w0"] = 0.1 * jax.random.normal(
        k0, (features[0], in_channels * 2, 4, 4), jnp.float32)
    params["b0"] = 0.1 * jax.random.normal(kb, (features[0],), jnp.float32)
    blocks = []
    cin = features[0]
    for feat in features[1:]:
        stride = 1 if feat == features[-1] else 2
        kw_, kg, kbt, key = jax.random.split(key, 4)
        blocks.append(dict(
            w=0.1 * jax.random.normal(kw_, (feat, cin, 4, 4), jnp.float32),
            gamma=1.0 + 0.1 * jax.random.normal(kg, (feat,), jnp.float32),
            beta=0.1 * jax.random.normal(kbt, (feat,), jnp.float32),
            stride=stride,
        ))
        cin = feat
    params["blocks"] = blocks
    return params


def discriminator_forward(params, x, y):
    h = jnp.concatenate([x, y], axis=1)                       # cat on channels
    # first_block: Conv(k4, s2, p1, reflect, bias) + LeakyReLU (fused)
    h = conv_lrelu_pallas(h, params["w0"], params["b0"], stride=2, pad=1)
    # ConvBlocks: Conv(k4, stride, p0, no bias) + InstanceNorm(affine) + LeakyReLU (fused)
    n_blocks = len(params["blocks"])
    for i, blk in enumerate(params["blocks"]):
        out_dtype = jnp.float32 if i == n_blocks - 1 else jnp.bfloat16
        h = convblock_pallas(h, blk["w"], blk["gamma"], blk["beta"],
                             stride=blk["stride"], out_dtype=out_dtype)
    return h


# ---------------------------------------------------------------------------
# Pure-JAX reference (same bf16-input / f32-accumulate matmul policy as kernel)
# ---------------------------------------------------------------------------
def _conv_ref(x, w, b, stride, pad):
    if pad > 0:
        x = jnp.pad(x, ((0, 0), (0, 0), (pad, pad), (pad, pad)), mode="reflect")
    out = lax.conv_general_dilated(
        x.astype(jnp.bfloat16), w.astype(jnp.bfloat16),
        (stride, stride), "VALID",
        dimension_numbers=("NCHW", "OIHW", "NCHW"),
        preferred_element_type=jnp.float32,
    )
    if b is not None:
        out = out + b[None, :, None, None]
    return out


def discriminator_ref(params, x, y):
    h = jnp.concatenate([x, y], axis=1)
    h = _conv_ref(h, params["w0"], params["b0"], 2, 1)
    h = jnp.where(h > 0, h, NEG_SLOPE * h)
    for blk in params["blocks"]:
        h = _conv_ref(h, blk["w"], None, blk["stride"], 0)
        mean = jnp.mean(h, axis=(2, 3), keepdims=True)
        var = jnp.mean((h - mean) ** 2, axis=(2, 3), keepdims=True)
        h = (h - mean) * lax.rsqrt(var + EPS)
        h = h * blk["gamma"][None, :, None, None] + blk["beta"][None, :, None, None]
        h = jnp.where(h > 0, h, NEG_SLOPE * h)
    return h


if __name__ == "__main__":
    in_channels = 2
    features = [8, 16, 32]
    B, H, W = 2, 32, 32

    key = jax.random.PRNGKey(0)
    kx, ky, kp = jax.random.split(key, 3)
    x = jax.random.normal(kx, (B, in_channels, H, W), jnp.float32)
    y = jax.random.normal(ky, (B, in_channels, H, W), jnp.float32)
    params = init_discriminator(kp, in_channels, features)

    out = jax.block_until_ready(discriminator_forward(params, x, y))
    ref = jax.block_until_ready(discriminator_ref(params, x, y))

    np.testing.assert_allclose(np.asarray(out, np.float32),
                               np.asarray(ref, np.float32),
                               rtol=2e-2, atol=5e-3)
    print("KERNEL_OK")
</pallas_src>

<mosaic_0001>
module attributes {stable_mosaic.version = 11 : i64} {
  func.func @_conv_bias_lrelu_kernel(%arg0: i32, %arg1: memref<64x256xbf16, #tpu.memory_space<vmem>>, %arg2: memref<8x64xbf16, #tpu.memory_space<vmem>>, %arg3: memref<8x1xf32, #tpu.memory_space<vmem>>, %arg4: memref<8x256xbf16, #tpu.memory_space<vmem>>) attributes {dimension_semantics = [#tpu.dimension_semantics<parallel>], iteration_bounds = array<i64: 2>, scalar_prefetch = 0 : i64, scratch_operands = 0 : i64, tpu.core_type = #tpu.core_type<tc>, window_params = [{transform_indices = @transform_0, window_bounds = array<i64: 64, 256>}, {pipeline_mode = #tpu.pipeline_mode<synchronous>, transform_indices = @transform_1, window_bounds = array<i64: 8, 64>}, {pipeline_mode = #tpu.pipeline_mode<synchronous>, transform_indices = @transform_2, window_bounds = array<i64: 8, 1>}, {transform_indices = @transform_3, window_bounds = array<i64: 8, 256>}]} {
    %c0 = arith.constant 0 : index
    %c0_0 = arith.constant 0 : index
    %0 = vector.load %arg2[%c0, %c0_0] : memref<8x64xbf16, #tpu.memory_space<vmem>>, vector<8x64xbf16>
    %c0_1 = arith.constant 0 : index
    %c0_2 = arith.constant 0 : index
    %1 = vector.load %arg1[%c0_1, %c0_2] : memref<64x256xbf16, #tpu.memory_space<vmem>>, vector<64x256xbf16>
    %cst = arith.constant dense<0.000000e+00> : vector<8x256xf32>
    %2 = tpu.matmul %0, %1, %cst {dimension_numbers = #tpu.dot_dimension_numbers<[1], [0], [0], [1], [0, 0, 1, 1], [], []>} : vector<8x64xbf16>, vector<64x256xbf16>, vector<8x256xf32> -> vector<8x256xf32>
    %c0_3 = arith.constant 0 : index
    %c0_4 = arith.constant 0 : index
    %3 = vector.load %arg3[%c0_3, %c0_4] : memref<8x1xf32, #tpu.memory_space<vmem>>, vector<8x1xf32>
    %4 = vector.broadcast %3 : vector<8x1xf32> to vector<8x256xf32>
    %5 = arith.addf %2, %4 : vector<8x256xf32>
    %cst_5 = arith.constant 0.000000e+00 : f32
    %6 = vector.broadcast %cst_5 : f32 to vector<8x256xf32>
    %7 = arith.cmpf ogt, %5, %6 : vector<8x256xf32>
    %cst_6 = arith.constant 2.000000e-01 : f32
    %8 = vector.broadcast %cst_6 : f32 to vector<8x256xf32>
    %9 = arith.mulf %8, %5 : vector<8x256xf32>
    %10 = arith.select %7, %5, %9 : vector<8x256xi1>, vector<8x256xf32>
    %11 = arith.truncf %10 : vector<8x256xf32> to vector<8x256xbf16>
    %c0_7 = arith.constant 0 : index
    %c0_8 = arith.constant 0 : index
    %12 = vector.load %arg4[%c0_7, %c0_8] : memref<8x256xbf16, #tpu.memory_space<vmem>>, vector<8x256xbf16>
    tpu.vector_store %arg4[%c0_7, %c0_8], %11 {strides = array<i32>} : memref<8x256xbf16, #tpu.memory_space<vmem>>, vector<8x256xbf16>,
    return
  }
  func.func @transform_0(%arg0: i32) -> (i32, i32) {
    %c0_i32 = arith.constant 0 : i32
    %c0_i32_0 = arith.constant 0 : i32
    return %c0_i32, %arg0 : i32, i32
  }
  func.func @transform_1(%arg0: i32) -> (i32, i32) {
    %c0_i32 = arith.constant 0 : i32
    %c0_i32_0 = arith.constant 0 : i32
    %c0_i32_1 = arith.constant 0 : i32
    return %c0_i32, %c0_i32_0 : i32, i32
  }
  func.func @transform_2(%arg0: i32) -> (i32, i32) {
    %c0_i32 = arith.constant 0 : i32
    %c0_i32_0 = arith.constant 0 : i32
    %c0_i32_1 = arith.constant 0 : i32
    return %c0_i32, %c0_i32_0 : i32, i32
  }
  func.func @transform_3(%arg0: i32) -> (i32, i32) {
    %c0_i32 = arith.constant 0 : i32
    %c0_i32_0 = arith.constant 0 : i32
    return %c0_i32, %arg0 : i32, i32
  }
}

</mosaic_0001>

<bundles_post_ra>
// kernel: tpu_custom_call.1
= control target key start
LH: loop header
LB: loop body
LE: loop exit
PB: predicated region body
PF: predicated region fallthrough
CT: control target
= control target key end

     0   :  { %8 = vsyncpa [#allocation3], 0  ;;  %s775_s0 = inlined_call_operand.hbm [shape: bf16[64,512], index: 0, kind: input, shape index: {}]   ;;  %s776_s1 = inlined_call_operand.vmem [shape: bf16[8,64], index: 1, kind: input, shape index: {}]   ;;  %s777_s2 = inlined_call_operand.vmem [shape: f32[8,1], index: 2, kind: input, shape index: {}]   ;;  %s778_s3 = inlined_call_operand.hbm [shape: bf16[8,512], index: 3, kind: output, shape index: {}]  }
   0x1   :  { %10 = vsyncpa [#allocation3 + $0x1], 0 }
   0x2   :  { %11 = vsyncpa [#allocation4], 0 }
   0x3   :  { %13 = vsyncpa [#allocation4 + $0x1], 0  ;;  %s606_s12 = smov 0   ;;  %s608_s13 = smov 0  }
   0x4   :  { %s610_s14 = smov 0   ;;  %s612_s15 = smov 0  }
   0x5 LB: > { %s627_s16 = sadd.s32 4294967295, %s578_s15   ;;  %s392_s17 = sadd.s32 4294967294, %s578_s15   ;;  %s578_s15 = sphi %s612_s15, %s792_s15   ;;  %s574_s14 = sphi %s610_s14, %s791_s14   ;;  %s570_s13 = sphi %s608_s13, %s790_s13   ;;  %s566_s12 = sphi %s606_s12, %s789_s12  }
   0x6   : > { %s631_s18 = sadd.s32 1, %s578_s15   ;;  %s26_s19 = sadd.s32 1, %s574_s14 }
   0x7   : > { %s23_s20 = ssub.s32 %s578_s15, %s631_s18  ;;  %p33_p0 = scmp.ne.s32.totalorder %s574_s14, %s570_s13 }
   0x8   : > { %p24_p1 = scmp.eq.s32.totalorder %s23_s20, 0  ;;  %p34_p2 = scmp.eq.s32.totalorder %s578_s15, 0 }
   0x9   : > { %p39_p3 = scmp.ne.s32.totalorder %s570_s13, %s566_s12  ;;  %p40_p4 = scmp.eq.s32.totalorder %s627_s16, 0 }
   0xa   : > { %s643_s21 = scalar_select %p24_p1, %s574_s14, %s26_s19  }
   0xb   : > { %p645_p5 = por %p34_p2, %p33_p0  ;;  %p649_p6 = por %p40_p4, %p39_p3 }
   0xc   : > { %p105_p7 = scmp.eq.s32.totalorder %s627_s16, 1  ;;  %p111_p8 = scmp.eq.s32.totalorder %s392_s17, 1 }
   0xd   : > { %p431_p10 = scmp.lt.s32.totalorder %s578_s15, 2  ;;  %s137_s26 = sand.u32 1, %s574_s14  }
   0xe   : > { %p656_p11 = por %p105_p7, %p33_p0  ;;  %p660_p12 = por %p111_p8, %p39_p3 }
   0xf   : > { %s416_s27 = sshll.u32 %s578_s15, 7  ;;  %s395_s28 = sshll.u32 %s137_s26, 6 }
  0x10   : > { %s782_s24 = scalar_select %p656_p11, 1, 0 }
  0x11   : > { %s783_s25 = scalar_select %p660_p12, 1, 0 }
  0x12   : > { %s669_s4 = scalar_lea.hbm %s775_s0, %s416_s27  ;;  %s141_s5 = scalar_lea.vmem [#allocation2], %s395_s28 }
  0x13   : > { %s148_s6 = sshll.u32 %s141_s5, 4  ;;  %p673_p13 = pnand %p431_p10, %p645_p5  ;;  %s677_s6 = int_to_ptr.vmem [resolvable:$true] %s148_s6 }
  0x14   : > { %s680_s8 = scalar_lea.sflag [#allocation3], %s137_s26  ;;  %s482_s9 = scalar_lea.hbm %s669_s4, 1024 }
  0x15   : > { %p483_p1 = scmp.ne.s32.totalorder %s669_s4, %s482_s9  ;;  %p484_p2 = pneg %p673_p13 }
  0x16   : > { %s487_s17 = scalar_lea.hbm %s775_s0, 2048  ;;  %p488_p5 = scmp.lt.u32.totalorder %s669_s4, %s775_s0 }
  0x17   : > { %p485_p3 = pnand %p484_p2, %p483_p1  ;;  %p489_p7 = scmp.lt.u32.totalorder %s487_s17, %s482_s9 }
  0x18   : > { %p491_p10 = scmp.lt.u32.totalorder %s482_s9, %s669_s4 }
  0x19   : > { %p486_p4 = pneg %p485_p3  ;;  %p490_p8 = por %p489_p7, %p488_p5 }
  0x1b   : > { %p492_p9 = por %p491_p10, %p490_p8 }
  0x1d   : > { %p493_p0 = pnand %p492_p9, %p486_p4 }
  0x1f   : > { %496 = shalt.err (!%p493_p0)
}
  0x20   : > { %s497_s22 = scalar_lea.vmem %s677_s6, 1024  ;;  %s580_s26 = smov [#allocation2]  }
  0x21   : > { %p498_p1 = scmp.ne.s32.totalorder %s677_s6, %s497_s22  ;;  %s502_s27 = sshll.u32 %s580_s26, 4  ;;  %s503_s27 = int_to_ptr.vmem [resolvable:$false] %s502_s27 }
  0x22   : > { %s504_s28 = scalar_lea.vmem %s503_s27, 2048  ;;  %p505_p11 = scmp.lt.s32.totalorder %s677_s6, %s503_s27 }
  0x23   : > { %p500_p3 = pnand %p498_p1, %p484_p2  ;;  %p506_p5 = scmp.lt.s32.totalorder %s504_s28, %s497_s22 }
  0x25   : > { %p501_p12 = pneg %p500_p3  ;;  %p507_p7 = por %p506_p5, %p505_p11 }
  0x27   : > { %p508_p8 = pnand %p507_p7, %p501_p12 }
  0x29   : > { %511 = shalt.err (!%p508_p8)
}
  0x2a   : > { %s581_s29 = smov 256   ;;  %s582_s30 = smov 128  }
  0x2b   : > { %s583_s5 = smov 8   ;;  %p156_p9 = scmp.lt.s32.totalorder %s578_s15, 3 }
  0x2c   : > { %426 = dma.hbm_to_vmem [thread:$0]  (!%p673_p13), %s669_s4, 1024, %s677_s6, %s680_s8, %s581_s29, %s582_s30, %s583_s5  }
  0x2d   : > { %p785_p0 = scmp.ge.s32.totalorder %s578_s15, 1 }
  0x2f   : > { %p157_p2 = pnand %p785_p0, %p156_p9 }
  0x30   : > { %s712_s9 = sand.u32 (!%p157_p2), 1, %s570_s13  }
  0x31   : > { %160 = sbr.rel (%p157_p2) target bundleno = 309 (0x135), region = 32  ;;  %s399_s10 = sshll.u32 (!%p157_p2), %s712_s9, 6 }
  0x32   : > { %s163_s11 = scalar_lea.sflag (!%p157_p2), [#allocation3], %s712_s9  ;;  %s166_s17 = scalar_lea.vmem (!%p157_p2), [#allocation2], %s399_s10 }
  0x38   : > { %557 = dma.done.wait (%p649_p6), %s163_s11, 1024  }
  0x39   : > { %559 = vsyncadd (%p649_p6), %s163_s11, 4294966272  ;;  %v584_v0 = vmov 0   ;;  %v470_v1 = vld [vmem:[%s166_s17 + $0x4] ss:$8 sps:$4 sm:$0xff]   ;;  %v472_v2 = vld [vmem:[%s166_s17] ss:$8 sps:$4 sm:$0xff]  }
  0x3a   : > { %283 = vmatprep.mubr.bf16.mxu0 %v584_v0  ;;  %469 = vset.pattern.permute.xlu0 %v584_v0  ;;  %v473_v3 = vld [vmem:[%s166_s17 + $0x14] ss:$8 sps:$4 sm:$0xff]   ;;  %v475_v4 = vld [vmem:[%s166_s17 + $0x10] ss:$8 sps:$4 sm:$0xff]   ;;  %v476_v5 = vld [vmem:[%s166_s17 + $0x24] ss:$8 sps:$4 sm:$0xff]  }
  0x3b   : > { %251 = vmatprep.subr.bf16.mxu0 %v470_v1  ;;  %v201_v6 = vld [vmem:[%s777_s2] sm:$0xff]  ;;  %v479_v8 = vld [vmem:[%s166_s17 + $0x34] ss:$8 sps:$4 sm:$0xff]   ;;  %v481_v9 = vld [vmem:[%s166_s17 + $0x30] ss:$8 sps:$4 sm:$0xff]   ;;  %vm247_vm0 = vcmask 523264  }
  0x3c   : > { %252 = vmatpush1.bf16.msra.mxu0 %v472_v2  ;;  %204 = vperm.xlu0 %469, %v201_v6   ;;  %v478_v7 = vld [vmem:[%s166_s17 + $0x20] ss:$8 sps:$4 sm:$0xff]   ;;  %s400_s8 = sshll.u32 %s712_s9, 3  ;;  %s418_s19 = sshll.u32 %s627_s16, 7 }
  0x3d   : > { %253 = vmatprep.subr.bf16.mxu0 %v473_v3  ;;  %v192_v10 = vld [vmem:[%s776_s1] sm:$0xf]  ;;  %s188_s20 = scalar_lea.vmem [#allocation5], %s400_s8  ;;  %s731_s28 = scalar_lea.hbm %s778_s3, %s418_s19 }
  0x3e   : > { %s322_s22 = sshll.u32 %s188_s20, 4  ;;  %s308_s29 = scalar_lea.sflag [#allocation4], %s712_s9  ;;  %s733_s22 = int_to_ptr.vmem [resolvable:$true] %s322_s22 }
  0x3f   : > { %s512_s30 = scalar_lea.vmem %s733_s22, 128  ;;  %p786_p11 = scmp.ne.s32.totalorder %s782_s24, 0 }
  0x40   : > { %254 = vmatpush1.bf16.msra.mxu0 %v475_v4  ;;  %p513_p6 = scmp.ne.s32.totalorder %s733_s22, %s512_s30  ;;  %s585_s16 = smov [#allocation5]  }
  0x41   : > { %255 = vmatprep.subr.bf16.mxu0 %v476_v5  ;;  %s516_s5 = sshll.u32 %s585_s16, 4  ;;  %s517_s5 = int_to_ptr.vmem [resolvable:$false] %s516_s5 }
  0x42   : > { %p514_p12 = pnand %p513_p6, %p786_p11  ;;  %s518_s10 = scalar_lea.vmem %s517_s5, 256 }
  0x43   : > { %p519_p4 = scmp.lt.s32.totalorder %s733_s22, %s517_s5  ;;  %p520_p10 = scmp.lt.s32.totalorder %s518_s10, %s512_s30 }
  0x44   : > { %256 = vmatpush1.bf16.msra.mxu0 %v478_v7  ;;  %p515_p13 = pneg %p514_p12 }
  0x45   : > { %257 = vmatprep.subr.bf16.mxu0 %v479_v8  ;;  %p521_p1 = por %p520_p10, %p519_p4 }
  0x47   : > { %p522_p3 = pnand %p521_p1, %p515_p13 }
  0x48   : > { %258 = vmatpush1.bf16.msra.mxu0 %v481_v9 }
  0x4b   : > { %409 = vmatmul.mubr.msk.bf16.vlgmr.msra.gmra.mrb[0].mxu0 %vm247_vm0, %v192_v10 }
  0xbb   : > { %v205_v11 = vpop.permute.xlu0 %204 }
 0x11e   : > { %v285_v12 = vpop.f32.mrb[0].mxu0 }
 0x11f   : > { %v286_v13 = vadd.f32 %v285_v12, %v205_v11  ;;  %v287_v14 = vpop.f32.mrb[1].mxu0 }
 0x120   : > { %v288_v15 = vadd.f32 %v287_v14, %v205_v11  ;;  %v289_v16 = vpop.f32.mrb[2].mxu0 }
 0x121   : > { %vm292_vm1 = vcmp.gt.f32.partialorder %v286_v13, 0.0  ;;  %v294_v17 = vmul.f32 0.2, %v286_v13  ;;  %v290_v18 = vpop.f32.mrb[3].mxu0 }
 0x122   : > { %vm293_vm2 = vcmp.gt.f32.partialorder %v288_v15, 0.0  ;;  %v295_v19 = vmul.f32 0.2, %v288_v15 }
 0x123   : > { %v296_v20 = vsel %vm292_vm1, %v286_v13, %v294_v17 }
 0x124   : > { %v297_v21 = vsel %vm293_vm2, %v288_v15, %v295_v19 }
 0x125   : > { %v417_v22 = vpack.c.bf16 %v297_v21, %v296_v20 }
 0x127   : > { %306 = vst [vmem:[%s188_s20] sm:$0xff] %v417_v22 }
 0x128   : > { %525 = shalt.err (!%p522_p3)
}
 0x129   : > { %s526_s9 = scalar_lea.hbm %s731_s28, 128  ;;  %s530_s4 = scalar_lea.hbm %s778_s3, 256 }
 0x12a   : > { %p527_p5 = scmp.ne.s32.totalorder %s731_s28, %s526_s9  ;;  %p531_p9 = scmp.lt.u32.totalorder %s731_s28, %s778_s3 }
 0x12b   : > { %p532_p0 = scmp.lt.u32.totalorder %s530_s4, %s526_s9  ;;  %p534_p6 = scmp.lt.u32.totalorder %s526_s9, %s731_s28 }
 0x12c   : > { %p528_p7 = pnand %p527_p5, %p786_p11 }
 0x12d   : > { %p533_p2 = por %p532_p0, %p531_p9 }
 0x12e   : > { %p529_p8 = pneg %p528_p7 }
 0x12f   : > { %p535_p12 = por %p534_p6, %p533_p2 }
 0x131   : > { %p536_p13 = pnand %p535_p12, %p529_p8 }
 0x133   : > { %539 = shalt.err (!%p536_p13)
}
 0x134   : > { %421 = dma.vmem_to_hbm [thread:$0]  (%p786_p11), %s733_s22, 128, %s731_s28, %s308_s29  }
 0x135 PF: > { %s334_s7 = sand.u32 1, %s566_s12   ;;  %p787_p4 = scmp.ne.s32.totalorder %s783_s25, 0 }
 0x136   : > { %p788_p10 = scmp.ge.s32.totalorder %s578_s15, 2  ;;  %s335_s8 = scalar_lea.sflag [#allocation4], %s334_s7 }
 0x138   : > { %p428_p1 = pnand %p788_p10, %p787_p4 }
 0x13a   : > { %561 = dma.done.wait (!%p428_p1), %s335_s8, 128  }
 0x13b   : > { %563 = vsyncadd (!%p428_p1), %s335_s8, 4294967168  ;;  %p16_p3 = scmp.ge.s32.totalorder %s631_s18, 4   ;;  %s789_s12 = smov %s570_s13 }
 0x13c   : > { %s790_s13 = smov %s574_s14  ;;  %s791_s14 = smov %s643_s21 }
 0x13d   : > { %s792_s15 = smov %s631_s18  ;;  %18 = sbr.rel (!%p16_p3) target bundleno = 5 (0x5), region = 77 }
 0x144   :  { %340 = vsyncpa [#allocation3], 1 }
 0x145   :  { %342 = vsyncpa [#allocation3 + $0x1], 1 }
 0x146   :  { %343 = vsyncpa [#allocation4], 1 }
 0x147   :  { %345 = vsyncpa [#allocation4 + $0x1], 1 }

</bundles_post_ra>
